<compile_context>
chip_gen: v7x
topology: tpu7x:2x2x1
jax: 0.10.0
libtpu: 0.0.40
codegen_flags: <defaults>
</compile_context>

<pallas_src>
import jax
import jax.numpy as jnp
from jax.experimental import pallas as pl
from jax.experimental.pallas import tpu as pltpu


def _fused_linear_kernel(x_ref, wt_ref, b_ref, o_ref):
    # x_ref:  (TM, K)    one batch tile
    # wt_ref: (K, Np)    fused+padded transposed weights (resident every step)
    # b_ref:  (1, Np)    fused+padded bias row
    # o_ref:  (TM, Np)   lane-dense (Np % 128 == 0) output tile
    acc = jnp.dot(x_ref[...], wt_ref[...], preferred_element_type=jnp.float32)
    o_ref[...] = (acc + b_ref[...]).astype(o_ref.dtype)


def _linear_pallas(x, wt_pad, b_pad, *, tm):
    """y = x @ wt_pad + b_pad with batch tiling. Returns f32 (M, Np)."""
    M, K = x.shape
    Np = wt_pad.shape[1]

    if M <= tm:
        # Tiny batch: single grid step, full-array blocks (no pipeline overhead).
        tm_eff = M
        m_padded = M
    else:
        # Large batch: 128/256-friendly tile; pad ragged tail instead of asserting.
        tm_eff = tm
        m_padded = pl.cdiv(M, tm_eff) * tm_eff
        if m_padded != M:
            x = jnp.pad(x, ((0, m_padded - M), (0, 0)))

    grid = (m_padded // tm_eff,)

    out = pl.pallas_call(
        _fused_linear_kernel,
        out_shape=jax.ShapeDtypeStruct((m_padded, Np), jnp.float32),
        grid_spec=pltpu.PrefetchScalarGridSpec(
            num_scalar_prefetch=0,
            grid=grid,
            in_specs=[
                pl.BlockSpec((tm_eff, K), lambda i: (i, 0)),   # x batch tile
                pl.BlockSpec((K, Np), lambda i: (0, 0)),       # fused W^T, resident
                pl.BlockSpec((1, Np), lambda i: (0, 0)),       # fused bias row
            ],
            out_specs=pl.BlockSpec((tm_eff, Np), lambda i: (i, 0)),
        ),
        compiler_params=pltpu.CompilerParams(
            dimension_semantics=("parallel",),   # shards batch tiles across v7x TCs
            vmem_limit_bytes=64 << 20,           # generous, well under v7x physical
        ),
    )(x, wt_pad, b_pad)

    return out[:M]


def multi_linear_forward(x, weights, biases, *, tm=512, use_bf16=False):
    """Pallas equivalent of Multi([nn.Linear(K, N)] * num_mods)(x).

    x:       (M, K) float32, with M == len(weights) (Multi's length check)
    weights: list of (N, K) float32  (PyTorch nn.Linear layout)
    biases:  list of (N,)   float32
    returns  list of (M, N) float32, one per submodule
    """
    num_mods = len(weights)
    if x.shape[0] != num_mods:
        raise ValueError(
            f"Number of inputs {x.shape[0]} must equal number of modules {num_mods}"
        )

    M, K = x.shape
    N = weights[0].shape[0]
    n_total = num_mods * N

    # Fuse all submodule Linears into one matmul: concat along output features.
    w_all = jnp.concatenate(list(weights), axis=0)        # (num_mods*N, K)
    b_all = jnp.concatenate(list(biases), axis=0)         # (num_mods*N,)
    wt = w_all.T                                          # (K, num_mods*N)

    # Lane-dense output: pad columns up to a multiple of 128 lanes.
    n_pad = max(128, ((n_total + 127) // 128) * 128)
    if n_pad != n_total:
        wt = jnp.pad(wt, ((0, 0), (0, n_pad - n_total)))
        b_all = jnp.pad(b_all, (0, n_pad - n_total))
    b2 = b_all.reshape(1, n_pad).astype(jnp.float32)

    if use_bf16:
        x_in = x.astype(jnp.bfloat16)
        wt = wt.astype(jnp.bfloat16)
    else:
        x_in = x
        wt = wt.astype(jnp.float32)

    y_all = _linear_pallas(x_in, wt, b2, tm=tm)           # (M, n_pad) f32

    # Split fused output back into the per-module list; drop lane padding.
    return [y_all[:, i * N:(i + 1) * N] for i in range(num_mods)]


if __name__ == "__main__":
    # Multi with 2 submodules nn.Linear(32, 64); Multi requires len(x) == 2.
    num_mods, in_features, out_features = 2, 32, 64
    batch = num_mods

    key = jax.random.PRNGKey(0)
    kx, *kws = jax.random.split(key, 1 + 2 * num_mods)

    x = jax.random.normal(kx, (batch, in_features), dtype=jnp.float32)
    weights = [
        jax.random.normal(kws[2 * i], (out_features, in_features), dtype=jnp.float32) * 0.1
        for i in range(num_mods)
    ]
    biases = [
        jax.random.normal(kws[2 * i + 1], (out_features,), dtype=jnp.float32) * 0.1
        for i in range(num_mods)
    ]

    ys = multi_linear_forward(x, weights, biases)
    ys = [jax.block_until_ready(y) for y in ys]

    # Pure-JAX reference of Multi.forward: [mod(x) for mod in mods]
    ys_ref = [x @ w.T + b for w, b in zip(weights, biases)]

    assert len(ys) == num_mods
    for y, y_ref in zip(ys, ys_ref):
        assert y.shape == (batch, out_features)
        assert jnp.allclose(y, y_ref, atol=1e-4, rtol=1e-4), "mismatch vs reference"

    print("KERNEL_OK")
</pallas_src>

<mosaic_0001>
module attributes {stable_mosaic.version = 11 : i64} {
  func.func @_fused_linear_kernel(%arg0: i32, %arg1: memref<2x32xf32, #tpu.memory_space<vmem>>, %arg2: memref<32x128xf32, #tpu.memory_space<vmem>>, %arg3: memref<1x128xf32, #tpu.memory_space<vmem>>, %arg4: memref<2x128xf32, #tpu.memory_space<vmem>>) attributes {dimension_semantics = [#tpu.dimension_semantics<parallel>], iteration_bounds = array<i64: 1>, scalar_prefetch = 0 : i64, scratch_operands = 0 : i64, tpu.core_type = #tpu.core_type<tc>, window_params = [{transform_indices = @transform_0, window_bounds = array<i64: 2, 32>}, {pipeline_mode = #tpu.pipeline_mode<synchronous>, transform_indices = @transform_1, window_bounds = array<i64: 32, 128>}, {pipeline_mode = #tpu.pipeline_mode<synchronous>, transform_indices = @transform_2, window_bounds = array<i64: 1, 128>}, {transform_indices = @transform_3, window_bounds = array<i64: 2, 128>}]} {
    %c0 = arith.constant 0 : index
    %c0_0 = arith.constant 0 : index
    %0 = vector.load %arg1[%c0, %c0_0] : memref<2x32xf32, #tpu.memory_space<vmem>>, vector<2x32xf32>
    %c0_1 = arith.constant 0 : index
    %c0_2 = arith.constant 0 : index
    %1 = vector.load %arg2[%c0_1, %c0_2] : memref<32x128xf32, #tpu.memory_space<vmem>>, vector<32x128xf32>
    %cst = arith.constant dense<0.000000e+00> : vector<2x128xf32>
    %2 = tpu.matmul %0, %1, %cst {dimension_numbers = #tpu.dot_dimension_numbers<[1], [0], [0], [1], [0, 0, 1, 1], [], []>} : vector<2x32xf32>, vector<32x128xf32>, vector<2x128xf32> -> vector<2x128xf32>
    %c0_3 = arith.constant 0 : index
    %c0_4 = arith.constant 0 : index
    %3 = vector.load %arg3[%c0_3, %c0_4] : memref<1x128xf32, #tpu.memory_space<vmem>>, vector<1x128xf32>
    %4 = vector.broadcast %3 : vector<1x128xf32> to vector<2x128xf32>
    %5 = arith.addf %2, %4 : vector<2x128xf32>
    %c0_5 = arith.constant 0 : index
    %c0_6 = arith.constant 0 : index
    %6 = vector.load %arg4[%c0_5, %c0_6] : memref<2x128xf32, #tpu.memory_space<vmem>>, vector<2x128xf32>
    tpu.vector_store %arg4[%c0_5, %c0_6], %5 {strides = array<i32>} : memref<2x128xf32, #tpu.memory_space<vmem>>, vector<2x128xf32>,
    return
  }
  func.func @transform_0(%arg0: i32) -> (i32, i32) {
    %c0_i32 = arith.constant 0 : i32
    %c0_i32_0 = arith.constant 0 : i32
    return %arg0, %c0_i32 : i32, i32
  }
  func.func @transform_1(%arg0: i32) -> (i32, i32) {
    %c0_i32 = arith.constant 0 : i32
    %c0_i32_0 = arith.constant 0 : i32
    %c0_i32_1 = arith.constant 0 : i32
    return %c0_i32, %c0_i32_0 : i32, i32
  }
  func.func @transform_2(%arg0: i32) -> (i32, i32) {
    %c0_i32 = arith.constant 0 : i32
    %c0_i32_0 = arith.constant 0 : i32
    %c0_i32_1 = arith.constant 0 : i32
    return %c0_i32, %c0_i32_0 : i32, i32
  }
  func.func @transform_3(%arg0: i32) -> (i32, i32) {
    %c0_i32 = arith.constant 0 : i32
    %c0_i32_0 = arith.constant 0 : i32
    return %arg0, %c0_i32 : i32, i32
  }
}

</mosaic_0001>

<bundles_post_ra>
// kernel: tpu_custom_call.1
= control target key start
LH: loop header
LB: loop body
LE: loop exit
PB: predicated region body
PF: predicated region fallthrough
CT: control target
= control target key end

     0   :  { %8 = vsyncpa [#allocation3], 0  ;;  %s359_s0 = inlined_call_operand.hbm [shape: f32[2,32], index: 0, kind: input, shape index: {}]   ;;  %s360_s1 = inlined_call_operand.hbm [shape: f32[32,128], index: 1, kind: input, shape index: {}]   ;;  %s361_s2 = inlined_call_operand.hbm [shape: f32[1,128], index: 2, kind: input, shape index: {}]   ;;  %s362_s3 = inlined_call_operand.hbm [shape: f32[2,128], index: 3, kind: output, shape index: {}]  }
   0x1   :  { %9 = vsyncpa [#allocation6], 0 }
   0x2   :  { %10 = vsyncpa [#allocation4], 0  ;;  %s282_s12 = smov [#allocation5]   ;;  %s188_s16 = scalar_lea.hbm %s360_s1, 512 }
   0x3   :  { %s26_s13 = sshll.u32 %s282_s12, 4  ;;  %p189_p0 = scmp.ne.s32.totalorder %s360_s1, %s188_s16  ;;  %s27_s13 = int_to_ptr.vmem [resolvable:$true] %s26_s13 }
   0x4   :  { %p192_p1 = scmp.lt.u32.totalorder %s188_s16, %s360_s1 }
   0x6   :  { %p194_p2 = pnand %p192_p1, %p189_p0 }
   0x8   :  { %197 = shalt.err (!%p194_p2)
}
   0x9   :  { %s198_s21 = scalar_lea.vmem %s27_s13, 512  ;;  %p203_p4 = scmp.lt.s32.totalorder %s27_s13, %s27_s13 }
   0xa   :  { %p199_p3 = scmp.ne.s32.totalorder %s27_s13, %s198_s21  ;;  %p204_p5 = scmp.lt.s32.totalorder %s198_s21, %s198_s21 }
   0xc   :  { %p205_p6 = por %p204_p5, %p203_p4 }
   0xe   :  { %p206_p7 = pnand %p205_p6, %p199_p3 }
  0x10   :  { %209 = shalt.err (!%p206_p7)
}
  0x11   :  { %s283_s22 = smov 128   ;;  %s284_s23 = smov 8  }
  0x12   :  { %32 = dma.hbm_to_vmem [thread:$0]  %s360_s1, 512, %s27_s13, [#allocation6], %s283_s22, %s283_s22, %s284_s23  }
  0x13   :  { %s285_s26 = smov [#allocation2]   ;;  %s286_s28 = smov [#allocation7]  }
  0x14   :  { %s17_s27 = sshll.u32 %s285_s26, 4  ;;  %s39_s29 = sshll.u32 %s286_s28, 4  ;;  %s18_s27 = int_to_ptr.vmem [resolvable:$true] %s17_s27  ;;  %s40_s29 = int_to_ptr.vmem [resolvable:$true] %s39_s29 }
  0x15   :  { %s210_s5 = scalar_lea.hbm %s359_s0, 32 }
  0x16   :  { %p211_p8 = scmp.ne.s32.totalorder %s359_s0, %s210_s5  ;;  %p214_p9 = scmp.lt.u32.totalorder %s210_s5, %s359_s0 }
  0x18   :  { %p216_p10 = pnand %p214_p9, %p211_p8 }
  0x1a   :  { %219 = shalt.err (!%p216_p10)
}
  0x1b   :  { %s220_s1 = scalar_lea.vmem %s18_s27, 32  ;;  %p225_p12 = scmp.lt.s32.totalorder %s18_s27, %s18_s27 }
  0x1c   :  { %p221_p11 = scmp.ne.s32.totalorder %s18_s27, %s220_s1  ;;  %p226_p13 = scmp.lt.s32.totalorder %s220_s1, %s220_s1 }
  0x1e   :  { %p227_p0 = por %p226_p13, %p225_p12 }
  0x20   :  { %p228_p1 = pnand %p227_p0, %p221_p11 }
  0x22   :  { %231 = shalt.err (!%p228_p1)
}
  0x23   :  { %20 = dma.hbm_to_vmem [thread:$0]  %s359_s0, 32, %s18_s27, [#allocation3]  }
  0x24   :  { %s232_s14 = scalar_lea.hbm %s361_s2, 16 }
  0x25   :  { %p233_p2 = scmp.ne.s32.totalorder %s361_s2, %s232_s14  ;;  %p236_p3 = scmp.lt.u32.totalorder %s232_s14, %s361_s2 }
  0x27   :  { %p238_p4 = pnand %p236_p3, %p233_p2 }
  0x29   :  { %241 = shalt.err (!%p238_p4)
}
  0x2a   :  { %s242_s19 = scalar_lea.vmem %s40_s29, 16  ;;  %s246_s20 = scalar_lea.vmem %s40_s29, 32 }
  0x2b   :  { %p243_p5 = scmp.ne.s32.totalorder %s40_s29, %s242_s19  ;;  %p247_p6 = scmp.lt.s32.totalorder %s40_s29, %s40_s29 }
  0x2c   :  { %p248_p7 = scmp.lt.s32.totalorder %s246_s20, %s242_s19 }
  0x2e   :  { %p249_p8 = por %p248_p7, %p247_p6 }
  0x30   :  { %p250_p9 = pnand %p249_p8, %p243_p5 }
  0x32   :  { %253 = shalt.err (!%p250_p9)
}
  0x33   :  { %42 = dma.hbm_to_vmem [thread:$0]  %s361_s2, 16, %s40_s29, [#allocation6]  }
  0x34   :  { %276 = dma.done.wait [#allocation3], 32  }
  0x35   :  { %277 = vsyncadd [#allocation3], 4294967264 }
  0x36   :  { %278 = dma.done.wait [#allocation6], 528  }
  0x37   :  { %279 = vsyncadd [#allocation6], 4294966768  ;;  %v287_v0 = vmov 0.0|0.0   ;;  %vm288_vm0 = vmmov 0   ;;  %v289_v1 = vmov 0.0   ;;  %v53_v2 = vld [vmem:[#allocation5] sm:$0xff] }
  0x38   :  { %173 = vmatprep.subr.bf16.mxu0 %v287_v0  ;;  %170 = vmatprep.mubr.msk.f32.mxu0 %vm288_vm0, %v289_v1  ;;  %v54_v3 = vld [vmem:[#allocation5 + $0x8] sm:$0xff]  ;;  %v55_v4 = vld [vmem:[#allocation5 + $0x10] sm:$0xff]  ;;  %v56_v6 = vld [vmem:[#allocation5 + $0x18] sm:$0xff]  ;;  %vm64_vm1 = vcmask 261120   ;;  %s290_s2 = smov [#allocation8]  }
  0x39   :  { %v174_v5 = vpack.c.bf16 %v54_v3, %v53_v2  ;;  %v177_v7 = vpack.c.bf16 %v56_v6, %v55_v4  ;;  %v52_v8 = vld [vmem:[#allocation2] sm:$0x3]  ;;  %v155_v9 = vld [vmem:[#allocation7] ss:$0 sm:$0xff]  ;;  %s145_s22 = sshll.u32 %s290_s2, 4  ;;  %s146_s22 = int_to_ptr.vmem [resolvable:$true] %s145_s22 }
  0x3a   :  { %s254_s23 = scalar_lea.vmem %s146_s22, 32  ;;  %p259_p11 = scmp.lt.s32.totalorder %s146_s22, %s146_s22 }
  0x3b   :  { %175 = vmatpush3.bf16.msra.mxu0 %v174_v5  ;;  %p255_p10 = scmp.ne.s32.totalorder %s146_s22, %s254_s23  ;;  %p260_p12 = scmp.lt.s32.totalorder %s254_s23, %s254_s23 }
  0x3c   :  { %176 = vmatprep.subr.bf16.mxu0 %v287_v0 }
  0x3d   :  { %p261_p13 = por %p260_p12, %p259_p11 }
  0x3f   :  { %178 = vmatpush3.bf16.msra.mxu0 %v177_v7  ;;  %p262_p0 = pnand %p261_p13, %p255_p10 }
  0x42   :  { %171 = vmatmul.mubr.msk.f32.vlgmr.msra.gmra.mrb[0].mxu0 %vm64_vm1, %v52_v8 }
 0x115   :  { %v134_v10 = vpop.f32.mrb[0].mxu0 }
 0x116   :  { %v135_v11 = vadd.f32 %v155_v9, %v134_v10  ;;  %v172_v12 = vpop.f32.mrb[1].mxu0 }
 0x118   :  { %138 = vst [vmem:[#allocation8] sm:$0x3] %v135_v11 }
 0x119   :  { %265 = shalt.err (!%p262_p0)
}
 0x11a   :  { %s266_s26 = scalar_lea.hbm %s362_s3, 32 }
 0x11b   :  { %p267_p1 = scmp.ne.s32.totalorder %s362_s3, %s266_s26  ;;  %p270_p2 = scmp.lt.u32.totalorder %s266_s26, %s362_s3 }
 0x11d   :  { %p272_p3 = pnand %p270_p2, %p267_p1 }
 0x11f   :  { %275 = shalt.err (!%p272_p3)
}
 0x120   :  { %148 = dma.vmem_to_hbm [thread:$0]  %s146_s22, 32, %s362_s3, [#allocation4]  }
 0x121   :  { %280 = dma.done.wait [#allocation4], 32  }
 0x122   :  { %281 = vsyncadd [#allocation4], 4294967264 }
 0x123   :  { %152 = vsyncpa [#allocation3], 1 }
 0x124   :  { %153 = vsyncpa [#allocation6], 1 }
 0x125   :  { %154 = vsyncpa [#allocation4], 1 }

</bundles_post_ra>
